<compile_context>
chip_gen: v7x
topology: tpu7x:2x2x1
jax: 0.10.0
libtpu: 0.0.40
codegen_flags: <defaults>
</compile_context>

<pallas_src>
import numpy as np
import jax
import jax.numpy as jnp
from jax.experimental import pallas as pl
from jax.experimental.pallas import tpu as pltpu


# ---------------------------------------------------------------------------
# activation: fid == 0  ->  relu(x)**2 - relu(x - 0.5)**2   (pure VPU work)
# ---------------------------------------------------------------------------
def f_act(x):
    r = jnp.maximum(x, 0.0)
    r2 = jnp.maximum(x - 0.5, 0.0)
    return r * r - r2 * r2


def _round_up(x, m):
    return ((x + m - 1) // m) * m


# ---------------------------------------------------------------------------
# Fused kernel: full encoder + decoder stack for one batch tile.
#   args = (x_ref,
#           we_0, be_0, ..., we_{nL-1}, be_{nL-1},     # encoder weights (in,out) + biases (1,out)
#           wd_0, bd_0, ..., wd_{nL-1}, bd_{nL-1},     # decoder weights (in,out) + biases (1,out)
#           out_e_ref, out_ref)
# ---------------------------------------------------------------------------
def _make_fused_kernel(nL):
    def kernel(*args):
        x_ref = args[0]
        we = [args[1 + 2 * i] for i in range(nL)]
        be = [args[2 + 2 * i] for i in range(nL)]
        wd = [args[1 + 2 * nL + 2 * i] for i in range(nL)]
        bd = [args[2 + 2 * nL + 2 * i] for i in range(nL)]
        out_e_ref = args[1 + 4 * nL]
        out_ref = args[2 + 4 * nL]

        def lin(v, w_ref, b_ref):
            return jnp.dot(v, w_ref[...], preferred_element_type=jnp.float32) + b_ref[...]

        x = x_ref[...]

        # ---- encoder (mirrors AutoEncoder.forward exactly) ----
        x = f_act(lin(x, we[0], be[0]))
        for i in range(1, nL - 1):
            x = f_act(lin(x, we[i], be[i]))
        x = lin(x, we[nL - 1], be[nL - 1])
        out_e_ref[...] = x.astype(out_e_ref.dtype)

        # ---- decoder ----
        for i in range(nL - 1, 0, -1):
            x = f_act(lin(x, wd[i], bd[i]))
        x = lin(x, wd[0], bd[0])
        out_ref[...] = x.astype(out_ref.dtype)

    return kernel


# ---------------------------------------------------------------------------
# Wrapper: batch tiling, padding, specs, cost estimate.
# ---------------------------------------------------------------------------
def autoencoder_forward(params, inputs, tb_max=512):
    n_nodes = params["n_nodes"]
    nL = len(n_nodes) - 1
    nVar, nC = n_nodes[0], n_nodes[-1]

    shape = inputs.shape
    x = inputs.reshape(-1, nVar).astype(jnp.float32)
    B = x.shape[0]

    # batch tile: multiple of 8 sublanes, capped at tb_max rows
    TB = min(tb_max, _round_up(B, 8))
    TB = _round_up(TB, 8)
    Bp = _round_up(B, TB)
    if Bp != B:
        x = jnp.pad(x, ((0, Bp - B), (0, 0)))
    grid = (Bp // TB,)

    # flatten weights/biases; weights resident in VMEM via constant index maps
    flat = []
    in_specs = [pl.BlockSpec((TB, nVar), lambda i: (i, 0))]
    for (w, b) in params["enc"]:
        flat += [w, b]
        in_specs += [pl.BlockSpec(w.shape, lambda i: (0, 0)),
                     pl.BlockSpec(b.shape, lambda i: (0, 0))]
    for (w, b) in params["dec"]:
        flat += [w, b]
        in_specs += [pl.BlockSpec(w.shape, lambda i: (0, 0)),
                     pl.BlockSpec(b.shape, lambda i: (0, 0))]

    # advisory cost estimate (encoder + decoder matmuls, all f32)
    flops = 0
    for i in range(nL):
        flops += 2 * 2 * Bp * n_nodes[i] * n_nodes[i + 1]
    bytes_accessed = 4 * (Bp * nVar + sum(int(np.prod(a.shape)) for a in flat)
                          + Bp * nC + Bp * nVar)

    out_e, out = pl.pallas_call(
        _make_fused_kernel(nL),
        out_shape=(jax.ShapeDtypeStruct((Bp, nC), jnp.float32),
                   jax.ShapeDtypeStruct((Bp, nVar), jnp.float32)),
        grid=grid,
        in_specs=in_specs,
        out_specs=(pl.BlockSpec((TB, nC), lambda i: (i, 0)),
                   pl.BlockSpec((TB, nVar), lambda i: (i, 0))),
        compiler_params=pltpu.CompilerParams(
            dimension_semantics=("parallel",),
            vmem_limit_bytes=32 * 1024 * 1024),
        cost_estimate=pl.CostEstimate(flops=flops, transcendentals=0,
                                      bytes_accessed=bytes_accessed),
    )(x, *flat)

    out_e = out_e[:B]
    out = out[:B].reshape(shape)
    return out_e, out


# ---------------------------------------------------------------------------
# Deterministic parameter construction (mimics AutoEncoder.__init__):
#   encoders[i]: Linear(n_i, n_{i+1}), xavier_uniform(gain=1) weight
#   decoders[i]: Linear(n_{i+1}, n_i), weight tied = encoders[i].weight.T
# Weights stored pre-transposed to (in, out) for the kernel.
# Biases are zero-initialized in the module; small random values are used here
# purely to exercise the bias path in the numerical check.
# ---------------------------------------------------------------------------
def init_params(key, n_nodes):
    n_nodes = [int(n) for n in np.asarray(n_nodes).ravel()]
    nL = len(n_nodes) - 1
    keys = jax.random.split(key, 3 * nL)

    enc, dec = [], []
    for i in range(nL):
        din, dout = n_nodes[i], n_nodes[i + 1]
        bound = float(np.sqrt(6.0 / (din + dout)))          # xavier_uniform, gain=1
        W = jax.random.uniform(keys[3 * i], (dout, din), jnp.float32, -bound, bound)
        we = W.T                                             # (din, dout)  encoder, (in,out)
        wd = W                                               # (dout, din)  tied decoder, (in,out)
        be = 0.1 * jax.random.normal(keys[3 * i + 1], (1, dout), jnp.float32)
        bd = 0.1 * jax.random.normal(keys[3 * i + 2], (1, din), jnp.float32)
        enc.append((we, be))
        dec.append((wd, bd))

    return {"n_nodes": n_nodes, "enc": enc, "dec": dec}


# ---------------------------------------------------------------------------
# pure-JAX reference (same structure as AutoEncoder.forward) for sanity check
# ---------------------------------------------------------------------------
def _reference_forward(params, inputs):
    n_nodes = params["n_nodes"]
    nL = len(n_nodes) - 1
    nVar = n_nodes[0]
    shape = inputs.shape
    x = inputs.reshape(-1, nVar).astype(jnp.float32)
    enc, dec = params["enc"], params["dec"]

    x = f_act(x @ enc[0][0] + enc[0][1])
    for i in range(1, nL - 1):
        x = f_act(x @ enc[i][0] + enc[i][1])
    x = x @ enc[nL - 1][0] + enc[nL - 1][1]
    out_e = x
    for i in range(nL - 1, 0, -1):
        x = f_act(x @ dec[i][0] + dec[i][1])
    x = x @ dec[0][0] + dec[0][1]
    return out_e, x.reshape(shape)


if __name__ == "__main__":
    key = jax.random.PRNGKey(0)
    n_nodes = np.array([64, 32, 16])              # nVar=64, nL=2, nC=16

    kp, kx, kx2 = jax.random.split(key, 3)
    params = init_params(kp, n_nodes)

    # ---- main check: (2, 4, 64) -> viewed as (8, 64) ----
    x = jax.random.normal(kx, (2, 4, 64), jnp.float32)
    out_e, out = autoencoder_forward(params, x)
    jax.block_until_ready((out_e, out))

    ref_e, ref_o = _reference_forward(params, x)
    assert out_e.shape == (8, 16) and out.shape == (2, 4, 64)
    np.testing.assert_allclose(np.asarray(out_e), np.asarray(ref_e), rtol=1e-4, atol=1e-4)
    np.testing.assert_allclose(np.asarray(out), np.asarray(ref_o), rtol=1e-4, atol=1e-4)

    # ---- secondary check: non-multiple batch (padding) + multi-step grid ----
    x2 = jax.random.normal(kx2, (3, 5, 64), jnp.float32)     # B = 15
    out_e2, out2 = autoencoder_forward(params, x2, tb_max=8)  # TB=8 -> grid=(2,), padded to 16
    jax.block_until_ready((out_e2, out2))
    ref_e2, ref_o2 = _reference_forward(params, x2)
    np.testing.assert_allclose(np.asarray(out_e2), np.asarray(ref_e2), rtol=1e-4, atol=1e-4)
    np.testing.assert_allclose(np.asarray(out2), np.asarray(ref_o2), rtol=1e-4, atol=1e-4)

    print("KERNEL_OK")
</pallas_src>

<mosaic_0001>
module attributes {stable_mosaic.version = 11 : i64} {
  func.func @kernel(%arg0: i32, %arg1: memref<8x64xf32, #tpu.memory_space<vmem>>, %arg2: memref<64x32xf32, #tpu.memory_space<vmem>>, %arg3: memref<1x32xf32, #tpu.memory_space<vmem>>, %arg4: memref<32x16xf32, #tpu.memory_space<vmem>>, %arg5: memref<1x16xf32, #tpu.memory_space<vmem>>, %arg6: memref<32x64xf32, #tpu.memory_space<vmem>>, %arg7: memref<1x64xf32, #tpu.memory_space<vmem>>, %arg8: memref<16x32xf32, #tpu.memory_space<vmem>>, %arg9: memref<1x32xf32, #tpu.memory_space<vmem>>, %arg10: memref<8x16xf32, #tpu.memory_space<vmem>>, %arg11: memref<8x64xf32, #tpu.memory_space<vmem>>) attributes {dimension_semantics = [#tpu.dimension_semantics<parallel>], iteration_bounds = array<i64: 1>, scalar_prefetch = 0 : i64, scratch_operands = 0 : i64, tpu.core_type = #tpu.core_type<tc>, window_params = [{transform_indices = @transform_0, window_bounds = array<i64: 8, 64>}, {pipeline_mode = #tpu.pipeline_mode<synchronous>, transform_indices = @transform_1, window_bounds = array<i64: 64, 32>}, {pipeline_mode = #tpu.pipeline_mode<synchronous>, transform_indices = @transform_2, window_bounds = array<i64: 1, 32>}, {pipeline_mode = #tpu.pipeline_mode<synchronous>, transform_indices = @transform_3, window_bounds = array<i64: 32, 16>}, {pipeline_mode = #tpu.pipeline_mode<synchronous>, transform_indices = @transform_4, window_bounds = array<i64: 1, 16>}, {pipeline_mode = #tpu.pipeline_mode<synchronous>, transform_indices = @transform_5, window_bounds = array<i64: 32, 64>}, {pipeline_mode = #tpu.pipeline_mode<synchronous>, transform_indices = @transform_6, window_bounds = array<i64: 1, 64>}, {pipeline_mode = #tpu.pipeline_mode<synchronous>, transform_indices = @transform_7, window_bounds = array<i64: 16, 32>}, {pipeline_mode = #tpu.pipeline_mode<synchronous>, transform_indices = @transform_8, window_bounds = array<i64: 1, 32>}, {transform_indices = @transform_9, window_bounds = array<i64: 8, 16>}, {transform_indices = @transform_10, window_bounds = array<i64: 8, 64>}]} {
    %c0 = arith.constant 0 : index
    %c0_0 = arith.constant 0 : index
    %0 = vector.load %arg1[%c0, %c0_0] : memref<8x64xf32, #tpu.memory_space<vmem>>, vector<8x64xf32>
    %c0_1 = arith.constant 0 : index
    %c0_2 = arith.constant 0 : index
    %1 = vector.load %arg2[%c0_1, %c0_2] : memref<64x32xf32, #tpu.memory_space<vmem>>, vector<64x32xf32>
    %cst = arith.constant dense<0.000000e+00> : vector<8x32xf32>
    %2 = tpu.matmul %0, %1, %cst {dimension_numbers = #tpu.dot_dimension_numbers<[1], [0], [0], [1], [0, 0, 1, 1], [], []>} : vector<8x64xf32>, vector<64x32xf32>, vector<8x32xf32> -> vector<8x32xf32>
    %c0_3 = arith.constant 0 : index
    %c0_4 = arith.constant 0 : index
    %3 = vector.load %arg3[%c0_3, %c0_4] : memref<1x32xf32, #tpu.memory_space<vmem>>, vector<1x32xf32>
    %4 = vector.broadcast %3 : vector<1x32xf32> to vector<8x32xf32>
    %5 = arith.addf %2, %4 : vector<8x32xf32>
    %cst_5 = arith.constant 0.000000e+00 : f32
    %6 = vector.broadcast %cst_5 : f32 to vector<8x32xf32>
    %7 = arith.maximumf %5, %6 : vector<8x32xf32>
    %cst_6 = arith.constant 5.000000e-01 : f32
    %8 = vector.broadcast %cst_6 : f32 to vector<8x32xf32>
    %9 = arith.subf %5, %8 : vector<8x32xf32>
    %cst_7 = arith.constant 0.000000e+00 : f32
    %10 = vector.broadcast %cst_7 : f32 to vector<8x32xf32>
    %11 = arith.maximumf %9, %10 : vector<8x32xf32>
    %12 = arith.mulf %7, %7 : vector<8x32xf32>
    %13 = arith.mulf %11, %11 : vector<8x32xf32>
    %14 = arith.subf %12, %13 : vector<8x32xf32>
    %c0_8 = arith.constant 0 : index
    %c0_9 = arith.constant 0 : index
    %15 = vector.load %arg4[%c0_8, %c0_9] : memref<32x16xf32, #tpu.memory_space<vmem>>, vector<32x16xf32>
    %cst_10 = arith.constant dense<0.000000e+00> : vector<8x16xf32>
    %16 = tpu.matmul %14, %15, %cst_10 {dimension_numbers = #tpu.dot_dimension_numbers<[1], [0], [0], [1], [0, 0, 1, 1], [], []>} : vector<8x32xf32>, vector<32x16xf32>, vector<8x16xf32> -> vector<8x16xf32>
    %c0_11 = arith.constant 0 : index
    %c0_12 = arith.constant 0 : index
    %17 = vector.load %arg5[%c0_11, %c0_12] : memref<1x16xf32, #tpu.memory_space<vmem>>, vector<1x16xf32>
    %18 = vector.broadcast %17 : vector<1x16xf32> to vector<8x16xf32>
    %19 = arith.addf %16, %18 : vector<8x16xf32>
    %c0_13 = arith.constant 0 : index
    %c0_14 = arith.constant 0 : index
    %20 = vector.load %arg10[%c0_13, %c0_14] : memref<8x16xf32, #tpu.memory_space<vmem>>, vector<8x16xf32>
    tpu.vector_store %arg10[%c0_13, %c0_14], %19 {strides = array<i32>} : memref<8x16xf32, #tpu.memory_space<vmem>>, vector<8x16xf32>,
    %c0_15 = arith.constant 0 : index
    %c0_16 = arith.constant 0 : index
    %21 = vector.load %arg8[%c0_15, %c0_16] : memref<16x32xf32, #tpu.memory_space<vmem>>, vector<16x32xf32>
    %cst_17 = arith.constant dense<0.000000e+00> : vector<8x32xf32>
    %22 = tpu.matmul %19, %21, %cst_17 {dimension_numbers = #tpu.dot_dimension_numbers<[1], [0], [0], [1], [0, 0, 1, 1], [], []>} : vector<8x16xf32>, vector<16x32xf32>, vector<8x32xf32> -> vector<8x32xf32>
    %c0_18 = arith.constant 0 : index
    %c0_19 = arith.constant 0 : index
    %23 = vector.load %arg9[%c0_18, %c0_19] : memref<1x32xf32, #tpu.memory_space<vmem>>, vector<1x32xf32>
    %24 = vector.broadcast %23 : vector<1x32xf32> to vector<8x32xf32>
    %25 = arith.addf %22, %24 : vector<8x32xf32>
    %cst_20 = arith.constant 0.000000e+00 : f32
    %26 = vector.broadcast %cst_20 : f32 to vector<8x32xf32>
    %27 = arith.maximumf %25, %26 : vector<8x32xf32>
    %cst_21 = arith.constant 5.000000e-01 : f32
    %28 = vector.broadcast %cst_21 : f32 to vector<8x32xf32>
    %29 = arith.subf %25, %28 : vector<8x32xf32>
    %cst_22 = arith.constant 0.000000e+00 : f32
    %30 = vector.broadcast %cst_22 : f32 to vector<8x32xf32>
    %31 = arith.maximumf %29, %30 : vector<8x32xf32>
    %32 = arith.mulf %27, %27 : vector<8x32xf32>
    %33 = arith.mulf %31, %31 : vector<8x32xf32>
    %34 = arith.subf %32, %33 : vector<8x32xf32>
    %c0_23 = arith.constant 0 : index
    %c0_24 = arith.constant 0 : index
    %35 = vector.load %arg6[%c0_23, %c0_24] : memref<32x64xf32, #tpu.memory_space<vmem>>, vector<32x64xf32>
    %cst_25 = arith.constant dense<0.000000e+00> : vector<8x64xf32>
    %36 = tpu.matmul %34, %35, %cst_25 {dimension_numbers = #tpu.dot_dimension_numbers<[1], [0], [0], [1], [0, 0, 1, 1], [], []>} : vector<8x32xf32>, vector<32x64xf32>, vector<8x64xf32> -> vector<8x64xf32>
    %c0_26 = arith.constant 0 : index
    %c0_27 = arith.constant 0 : index
    %37 = vector.load %arg7[%c0_26, %c0_27] : memref<1x64xf32, #tpu.memory_space<vmem>>, vector<1x64xf32>
    %38 = vector.broadcast %37 : vector<1x64xf32> to vector<8x64xf32>
    %39 = arith.addf %36, %38 : vector<8x64xf32>
    %c0_28 = arith.constant 0 : index
    %c0_29 = arith.constant 0 : index
    %40 = vector.load %arg11[%c0_28, %c0_29] : memref<8x64xf32, #tpu.memory_space<vmem>>, vector<8x64xf32>
    tpu.vector_store %arg11[%c0_28, %c0_29], %39 {strides = array<i32>} : memref<8x64xf32, #tpu.memory_space<vmem>>, vector<8x64xf32>,
    return
  }
  func.func @transform_0(%arg0: i32) -> (i32, i32) {
    %c0_i32 = arith.constant 0 : i32
    %c0_i32_0 = arith.constant 0 : i32
    return %arg0, %c0_i32 : i32, i32
  }
  func.func @transform_1(%arg0: i32) -> (i32, i32) {
    %c0_i32 = arith.constant 0 : i32
    %c0_i32_0 = arith.constant 0 : i32
    %c0_i32_1 = arith.constant 0 : i32
    return %c0_i32, %c0_i32_0 : i32, i32
  }
  func.func @transform_2(%arg0: i32) -> (i32, i32) {
    %c0_i32 = arith.constant 0 : i32
    %c0_i32_0 = arith.constant 0 : i32
    %c0_i32_1 = arith.constant 0 : i32
    return %c0_i32, %c0_i32_0 : i32, i32
  }
  func.func @transform_3(%arg0: i32) -> (i32, i32) {
    %c0_i32 = arith.constant 0 : i32
    %c0_i32_0 = arith.constant 0 : i32
    %c0_i32_1 = arith.constant 0 : i32
    return %c0_i32, %c0_i32_0 : i32, i32
  }
  func.func @transform_4(%arg0: i32) -> (i32, i32) {
    %c0_i32 = arith.constant 0 : i32
    %c0_i32_0 = arith.constant 0 : i32
    %c0_i32_1 = arith.constant 0 : i32
    return %c0_i32, %c0_i32_0 : i32, i32
  }
  func.func @transform_5(%arg0: i32) -> (i32, i32) {
    %c0_i32 = arith.constant 0 : i32
    %c0_i32_0 = arith.constant 0 : i32
    %c0_i32_1 = arith.constant 0 : i32
    return %c0_i32, %c0_i32_0 : i32, i32
  }
  func.func @transform_6(%arg0: i32) -> (i32, i32) {
    %c0_i32 = arith.constant 0 : i32
    %c0_i32_0 = arith.constant 0 : i32
    %c0_i32_1 = arith.constant 0 : i32
    return %c0_i32, %c0_i32_0 : i32, i32
  }
  func.func @transform_7(%arg0: i32) -> (i32, i32) {
    %c0_i32 = arith.constant 0 : i32
    %c0_i32_0 = arith.constant 0 : i32
    %c0_i32_1 = arith.constant 0 : i32
    return %c0_i32, %c0_i32_0 : i32, i32
  }
  func.func @transform_8(%arg0: i32) -> (i32, i32) {
    %c0_i32 = arith.constant 0 : i32
    %c0_i32_0 = arith.constant 0 : i32
    %c0_i32_1 = arith.constant 0 : i32
    return %c0_i32, %c0_i32_0 : i32, i32
  }
  func.func @transform_9(%arg0: i32) -> (i32, i32) {
    %c0_i32 = arith.constant 0 : i32
    %c0_i32_0 = arith.constant 0 : i32
    return %arg0, %c0_i32 : i32, i32
  }
  func.func @transform_10(%arg0: i32) -> (i32, i32) {
    %c0_i32 = arith.constant 0 : i32
    %c0_i32_0 = arith.constant 0 : i32
    return %arg0, %c0_i32 : i32, i32
  }
}

</mosaic_0001>

<bundles_post_ra>
// kernel: tpu_custom_call.1
= control target key start
LH: loop header
LB: loop body
LE: loop exit
PB: predicated region body
PF: predicated region fallthrough
CT: control target
= control target key end

     0   :  { %16 = vsyncpa [#allocation3], 0  ;;  %v580_v3 = vmov 0.0|0.0   ;;  %vm581_vm0 = vmmov 0   ;;  %v582_v6 = vmov 0.0   ;;  %s750_s0 = inlined_call_operand.vmem [shape: f32[8,64], index: 0, kind: input, shape index: {}]   ;;  %s751_s1 = inlined_call_operand.vmem [shape: f32[64,32], index: 1, kind: input, shape index: {}]   ;;  %s752_s2 = inlined_call_operand.vmem [shape: f32[1,32], index: 2, kind: input, shape index: {}]   ;;  %s753_s3 = inlined_call_operand.vmem [shape: f32[32,16], index: 3, kind: input, shape index: {}]   ;;  %s754_s4 = inlined_call_operand.vmem [shape: f32[1,16], index: 4, kind: input, shape index: {}]   ;;  %s755_s5 = inlined_call_operand.vmem [shape: f32[32,64], index: 5, kind: input, shape index: {}]   ;;  %s756_s6 = inlined_call_operand.vmem [shape: f32[1,64], index: 6, kind: input, shape index: {}]   ;;  %s757_s7 = inlined_call_operand.vmem [shape: f32[16,32], index: 7, kind: input, shape index: {}]   ;;  %s758_s8 = inlined_call_operand.vmem [shape: f32[1,32], index: 8, kind: input, shape index: {}]   ;;  %s759_s9 = inlined_call_operand.hbm [shape: f32[8,16], index: 9, kind: output, shape index: {0}]   ;;  %s760_s10 = inlined_call_operand.hbm [shape: f32[8,64], index: 10, kind: output, shape index: {1}]  }
   0x1   :  { %v37_v0 = vld [vmem:[%s751_s1] sm:$0xff]  ;;  %v38_v1 = vld [vmem:[%s751_s1 + $0x8] sm:$0xff]  ;;  %v39_v2 = vld [vmem:[%s751_s1 + $0x10] sm:$0xff]  ;;  %500 = vmatprep.subr.bf16.mxu0 %v580_v3  ;;  %468 = vmatprep.mubr.msk.f32.mxu0 %vm581_vm0, %v582_v6 }
   0x2   :  { %v501_v4 = vpack.c.bf16 %v38_v1, %v37_v0  ;;  %v40_v5 = vld [vmem:[%s751_s1 + $0x18] sm:$0xff]  ;;  %512 = vmatprep.subr.bf16.mxu1 %v580_v3  ;;  %479 = vmatprep.mubr.msk.f32.mxu1 %vm581_vm0, %v582_v6 }
   0x3   :  { %v504_v7 = vpack.c.bf16 %v40_v5, %v39_v2 }
   0x4   :  { %502 = vmatpush3.bf16.msra.mxu0 %v501_v4 }
   0x5   :  { %17 = vsyncpa [#allocation5], 0  ;;  %503 = vmatprep.subr.bf16.mxu0 %v580_v3  ;;  %v41_v8 = vld [vmem:[%s751_s1 + $0x20] sm:$0xff]  ;;  %v42_v9 = vld [vmem:[%s751_s1 + $0x28] sm:$0xff]  ;;  %vm52_vm1 = vcmask 523264   ;;  %vm143_vm2 = vcmask 261120  }
   0x6   :  { %v507_v10 = vpack.c.bf16 %v42_v9, %v41_v8  ;;  %v43_v11 = vld [vmem:[%s751_s1 + $0x30] sm:$0xff]  ;;  %v44_v12 = vld [vmem:[%s751_s1 + $0x38] sm:$0xff]  ;;  %v36_v14 = vld [vmem:[%s750_s0] sm:$0xff]  ;;  %vm217_vm3 = vcmask 130048   ;;  %s583_s11 = smov [#allocation2]  }
   0x7   :  { %v510_v13 = vpack.c.bf16 %v44_v12, %v43_v11  ;;  %v132_v15 = vld [vmem:[%s753_s3] sm:$0xff]  ;;  %v133_v16 = vld [vmem:[%s753_s3 + $0x8] sm:$0xff]  ;;  %v134_v18 = vld [vmem:[%s753_s3 + $0x10] sm:$0xff]  ;;  %s398_s12 = sshll.u32 %s583_s11, 4  ;;  %s399_s12 = int_to_ptr.vmem [resolvable:$true] %s398_s12 }
   0x8   :  { %505 = vmatpush3.bf16.msra.mxu0 %v504_v7  ;;  %v513_v17 = vpack.c.bf16 %v133_v16, %v132_v15  ;;  %v135_v19 = vld [vmem:[%s753_s3 + $0x18] sm:$0xff]  ;;  %v420_v21 = vld [vmem:[%s752_s2] ss:$0 sm:$0xff]  ;;  %v220_v29 = vld [vmem:[%s757_s7 + $0x8] sm:$0xff]  ;;  %p537_p1 = scmp.lt.s32.totalorder %s399_s12, %s399_s12 }
   0x9   :  { %506 = vmatprep.subr.bf16.mxu0 %v580_v3  ;;  %v516_v20 = vpack.c.bf16 %v135_v19, %v134_v18  ;;  %v219_v28 = vld [vmem:[%s757_s7] sm:$0xff]  ;;  %v308_v39 = vld [vmem:[%s755_s5 + $0x8] sm:$0xff]  ;;  %v309_v41 = vld [vmem:[%s755_s5 + $0x10] sm:$0xff] }
   0xa   :  { %514 = vmatpush3.bf16.msra.mxu1 %v513_v17  ;;  %v519_v32 = vpack.c.bf16 %v220_v29, %v219_v28  ;;  %v423_v34 = vld [vmem:[%s754_s4] ss:$0 sm:$0xff]  ;;  %v310_v42 = vld [vmem:[%s755_s5 + $0x18] sm:$0xff] }
   0xb   :  { %515 = vmatprep.subr.bf16.mxu1 %v580_v3  ;;  %v307_v38 = vld [vmem:[%s755_s5] sm:$0xff]  ;;  %v525_v43 = vpack.c.bf16 %v310_v42, %v309_v41  ;;  %s532_s5 = scalar_lea.vmem %s399_s12, 128 }
   0xc   :  { %508 = vmatpush3.bf16.msra.mxu0 %v507_v10  ;;  %v522_v40 = vpack.c.bf16 %v308_v39, %v307_v38  ;;  %v425_v44 = vld [vmem:[%s758_s8] ss:$0 sm:$0xff]  ;;  %p533_p0 = scmp.ne.s32.totalorder %s399_s12, %s532_s5  ;;  %p538_p2 = scmp.lt.s32.totalorder %s532_s5, %s532_s5 }
   0xd   :  { %509 = vmatprep.subr.bf16.mxu0 %v580_v3 }
   0xe   :  { %517 = vmatpush3.bf16.msra.mxu1 %v516_v20  ;;  %p539_p3 = por %p538_p2, %p537_p1 }
   0xf   :  { %518 = vmatprep.subr.bf16.mxu1 %v580_v3 }
  0x10   :  { %511 = vmatpush3.bf16.msra.mxu0 %v510_v13  ;;  %p540_p4 = pnand %p539_p3, %p533_p0 }
  0x13   :  { %469 = vmatmul.mubr.msk.f32.vlgmr.msra.gmra.mrb[0].mxu0 %vm52_vm1, %v36_v14 }
  0xe6   :  { %v122_v22 = vpop.f32.mrb[0].mxu0 }
  0xe7   :  { %v123_v23 = vadd.f32 %v420_v21, %v122_v22  ;;  %v470_v24 = vpop.f32.mrb[1].mxu0 }
  0xe9   :  { %v126_v25 = vmax.f32 %v123_v23, 0.0  ;;  %v422_v26 = vadd.f32 -0.5, %v123_v23 }
  0xeb   :  { %v128_v27 = vmax.f32 %v422_v26, 0.0  ;;  %v129_v30 = vmul.f32 %v126_v25, %v126_v25 }
  0xed   :  { %v130_v31 = vmul.f32 %v128_v27, %v128_v27 }
  0xef   :  { %v131_v33 = vsub.f32 %v129_v30, %v130_v31 }
  0xf1   :  { %480 = vmatmul.mubr.msk.f32.vlgmr.msra.gmra.mrb[0].mxu1 %vm143_vm2, %v131_v33 }
  0xf2   :  { %520 = vmatpush3.bf16.msra.mxu1 %v519_v32  ;;  %486 = vmatprep.mubr.msk.f32.mxu1 %vm581_vm0, %v582_v6 }
  0xf3   :  { %521 = vmatprep.subr.bf16.mxu1 %v580_v3 }
 0x1c4   :  { %v213_v35 = vpop.f32.mrb[0].mxu1 }
 0x1c5   :  { %v214_v36 = vadd.f32 %v423_v34, %v213_v35  ;;  %v481_v37 = vpop.f32.mrb[1].mxu1 }
 0x1c7   :  { %487 = vmatmul.mubr.msk.f32.vlgmr.msra.gmra.mrb[2].mxu1 %vm217_vm3, %v214_v36  ;;  %218 = vst.msk [vmem:[#allocation2] sm:$0xff] %vm217_vm3, %v214_v36 }
 0x1c8   :  { %497 = vmatprep.mubr.msk.f32.mxu1 %vm581_vm0, %v582_v6  ;;  %523 = vmatpush3.bf16.msra.mxu1 %v522_v40 }
 0x1c9   :  { %524 = vmatprep.subr.bf16.mxu1 %v580_v3 }
 0x1cc   :  { %526 = vmatpush3.bf16.msra.mxu1 %v525_v43 }
 0x29a   :  { %v297_v45 = vpop.f32.mrb[2].mxu1 }
 0x29b   :  { %v298_v46 = vadd.f32 %v425_v44, %v297_v45  ;;  %v488_v47 = vpop.f32.mrb[3].mxu1 }
 0x29d   :  { %v301_v48 = vmax.f32 %v298_v46, 0.0  ;;  %v427_v49 = vadd.f32 -0.5, %v298_v46 }
 0x29f   :  { %v303_v50 = vmax.f32 %v427_v49, 0.0  ;;  %v304_v51 = vmul.f32 %v301_v48, %v301_v48 }
 0x2a1   :  { %v305_v52 = vmul.f32 %v303_v50, %v303_v50 }
 0x2a3   :  { %v306_v53 = vsub.f32 %v304_v51, %v305_v52 }
 0x2a5   :  { %498 = vmatmul.mubr.msk.f32.vlgmr.msra.gmra.mrb[4].mxu1 %vm143_vm2, %v306_v53 }
 0x2a6   :  { %543 = shalt.err (!%p540_p4)
}
 0x2a7   :  { %s544_s14 = scalar_lea.hbm %s759_s9, 128 }
 0x2a8   :  { %p545_p5 = scmp.ne.s32.totalorder %s759_s9, %s544_s14  ;;  %p548_p6 = scmp.lt.u32.totalorder %s544_s14, %s759_s9 }
 0x2aa   :  { %p550_p7 = pnand %p548_p6, %p545_p5 }
 0x2ac   :  { %553 = shalt.err (!%p550_p7)
}
 0x2ad   :  { %401 = dma.vmem_to_hbm [thread:$0]  %s399_s12, 128, %s759_s9, [#allocation3]   ;;  %v428_v54 = vld [vmem:[%s756_s6] ss:$0 sm:$0xff] }
 0x2ae   :  { %s584_s21 = smov [#allocation4]  }
 0x2af   :  { %s408_s3 = sshll.u32 %s584_s21, 4  ;;  %s409_s3 = int_to_ptr.vmem [resolvable:$true] %s408_s3 }
 0x2b0   :  { %s554_s2 = scalar_lea.vmem %s409_s3, 128  ;;  %p559_p9 = scmp.lt.s32.totalorder %s409_s3, %s409_s3 }
 0x2b1   :  { %p555_p8 = scmp.ne.s32.totalorder %s409_s3, %s554_s2  ;;  %p560_p10 = scmp.lt.s32.totalorder %s554_s2, %s554_s2 }
 0x2b3   :  { %p561_p11 = por %p560_p10, %p559_p9 }
 0x2b5   :  { %p562_p12 = pnand %p561_p11, %p555_p8 }
 0x378   :  { %v387_v55 = vpop.f32.mrb[4].mxu1 }
 0x379   :  { %v388_v56 = vadd.f32 %v428_v54, %v387_v55  ;;  %v499_v57 = vpop.f32.mrb[5].mxu1 }
 0x37b   :  { %391 = vst.msk [vmem:[#allocation4] sm:$0xff] %vm52_vm1, %v388_v56 }
 0x37c   :  { %565 = shalt.err (!%p562_p12)
}
 0x37d   :  { %s566_s7 = scalar_lea.hbm %s760_s10, 128 }
 0x37e   :  { %p567_p13 = scmp.ne.s32.totalorder %s760_s10, %s566_s7  ;;  %p570_p0 = scmp.lt.u32.totalorder %s566_s7, %s760_s10 }
 0x380   :  { %p572_p1 = pnand %p570_p0, %p567_p13 }
 0x382   :  { %575 = shalt.err (!%p572_p1)
}
 0x383   :  { %411 = dma.vmem_to_hbm [thread:$0]  %s409_s3, 128, %s760_s10, [#allocation5]  }
 0x384   :  { %576 = dma.done.wait [#allocation3], 128  }
 0x385   :  { %577 = vsyncadd [#allocation3], 4294967168 }
 0x386   :  { %578 = dma.done.wait [#allocation5], 128  }
 0x387   :  { %579 = vsyncadd [#allocation5], 4294967168 }
 0x388   :  { %418 = vsyncpa [#allocation3], 1 }
 0x389   :  { %419 = vsyncpa [#allocation5], 1 }

</bundles_post_ra>
